<compile_context>
chip_gen: v5e
topology: v5e:2x2
jax: 0.10.0
libtpu: 0.0.40
codegen_flags: <defaults>
</compile_context>

<pallas_src>
import functools

import jax
import jax.numpy as jnp
import numpy as np
from jax.experimental import pallas as pl
from jax.experimental.pallas import tpu as pltpu


# ----------------------------- quantization glue (plain JAX) -----------------------------

def calibrate_affine_u8(x):
    """Per-tensor asymmetric uint8 -> (scale, zero_point)."""
    qmin, qmax = 0.0, 255.0
    xmin = jnp.minimum(jnp.min(x), 0.0)
    xmax = jnp.maximum(jnp.max(x), 0.0)
    scale = jnp.maximum((xmax - xmin) / (qmax - qmin), 1e-8)
    zp = jnp.clip(jnp.round(qmin - xmin / scale), qmin, qmax)
    return scale.astype(jnp.float32), zp.astype(jnp.float32)


def calibrate_symmetric_s8(x):
    """Per-tensor symmetric int8 -> scale (zero_point = 0)."""
    amax = jnp.max(jnp.abs(x))
    return jnp.maximum(amax / 127.0, 1e-8).astype(jnp.float32)


def _fake_quant_affine(x, scale, zp, qmin, qmax):
    """Reference fake-quant (only used by the pure-JAX/numpy check)."""
    q = jnp.clip(jnp.round(x / scale) + zp, qmin, qmax)
    return (q - zp) * scale


# ----------------------------- Pallas kernel -----------------------------

def _qmatmul_dequant_bias_kernel(scale_ref, xq_ref, wq_ref, b_ref, out_ref):
    # xq_ref : (tm, K_pad)    bf16, integer-valued (q_x - zp_x) in [-255, 255]
    # wq_ref : (K_pad, tn)    bf16, integer-valued q_w in [-128, 127]
    # b_ref  : (1, tn)        f32,  BN-fused bias
    # scale  : (1,) f32 SMEM, combined dequant scale = x_scale * w_scale
    acc = jnp.dot(xq_ref[...], wq_ref[...], preferred_element_type=jnp.float32)
    out_ref[...] = (acc * scale_ref[0] + b_ref[...]).astype(out_ref.dtype)


# ----------------------------- tiling / VMEM helpers -----------------------------

def _round_up(a, b):
    return (a + b - 1) // b * b


def _cdiv(a, b):
    return -(-a // b)


_MIN_GRID_STEPS = 4  # >= 2 steps per TensorCore on 2-TC parts (v7x): megacore + per-core pipelining


@functools.lru_cache(maxsize=None)
def _tpu_vmem_config():
    """(vmem_budget_bytes, vmem_limit_bytes) for the local TPU generation."""
    phys = None
    try:
        phys = pltpu.get_tpu_info().vmem_capacity_bytes
    except Exception:
        phys = None
    if phys is None:
        kind = ""
        try:
            kind = jax.devices()[0].device_kind.lower()
        except Exception:
            pass
        # v3/v4/v5e/v6e have 128 MiB VMEM per TensorCore; be conservative otherwise (v7x: 64 MiB)
        phys = 128 * 2**20 if any(v in kind for v in ("v3", "v4", "v5", "v6")) else 64 * 2**20
    if phys >= 128 * 2**20:
        return 80 * 2**20, 100 * 2**20   # v5e / v6e: exploit the 128 MiB with large tiles
    return 24 * 2**20, 32 * 2**20        # v7x / unknown: conservative


def _vmem_per_step(tm, k_pad, tn, w_bufs, out_bytes):
    return (2 * tm * k_pad * 2          # double-buffered bf16 patch tile
            + w_bufs * k_pad * tn * 2   # weight tile (single-buffered when grid-invariant)
            + w_bufs * tn * 4           # bias tile
            + 2 * tm * tn * out_bytes)  # double-buffered output tile


def _choose_tiles(m, k_pad, cout_pad, vmem_budget, out_bytes):
    """Pick (tm, tn, weight_buffer_count)."""
    if cout_pad <= 512:
        tn_candidates = (cout_pad,)
    else:
        tn_candidates = tuple(t for t in (1024, 512, 256) if t <= cout_pad) or (cout_pad,)
    tm, tn, w_bufs = 128, tn_candidates[-1], 2
    for tn in tn_candidates:
        n_n = _cdiv(cout_pad, tn)
        w_bufs = 1 if n_n == 1 else 2          # grid-invariant weight -> single buffer
        if m < 256:
            tm = _round_up(max(m, 8), 8)       # tiny problem: one sublane-aligned block
        else:
            tm = 1024
            while tm > 128 and _vmem_per_step(tm, k_pad, tn, w_bufs, out_bytes) > vmem_budget:
                tm //= 2
            # keep >= _MIN_GRID_STEPS grid steps so both TCs get work and still pipeline
            while tm > 128 and _cdiv(m, tm) * n_n < _MIN_GRID_STEPS:
                tm //= 2
        if _vmem_per_step(tm, k_pad, tn, w_bufs, out_bytes) <= vmem_budget:
            break
    return tm, tn, w_bufs


def _spec(shape, index_map, single_buffer=False):
    if single_buffer:
        try:
            return pl.BlockSpec(shape, index_map, pipeline_mode=pl.Buffered(1))
        except Exception:
            pass  # older jax without pipeline_mode / Buffered: fall back to the default
    return pl.BlockSpec(shape, index_map)


def _im2col(x, kh, kw, stride, padding, dilation):
    """x: (N, C, H, W) -> patches (N*OH*OW, C*kh*kw), plus OH, OW. Zero padding."""
    n, c, h, w = x.shape
    sh, sw = stride
    ph, pw = padding
    dh, dw = dilation
    oh = (h + 2 * ph - dh * (kh - 1) - 1) // sh + 1
    ow = (w + 2 * pw - dw * (kw - 1) - 1) // sw + 1
    xp = jnp.pad(x, ((0, 0), (0, 0), (ph, ph), (pw, pw)))
    cols = []
    for i in range(kh):
        for j in range(kw):
            hs, ws_ = i * dh, j * dw
            cols.append(xp[:, :, hs:hs + sh * oh:sh, ws_:ws_ + sw * ow:sw])  # (N,C,OH,OW)
    p = jnp.stack(cols, axis=0)                     # (kh*kw, N, C, OH, OW)
    p = p.transpose(1, 3, 4, 2, 0)                  # (N, OH, OW, C, kh*kw)
    return p.reshape(n * oh * ow, c * kh * kw), oh, ow


# ----------------------------- wrapper -----------------------------

@functools.partial(jax.jit,
                   static_argnames=("stride", "padding", "dilation", "out_dtype", "out_layout"))
def fused_qat_conv_bn_forward(x, conv_w, conv_b, gamma, beta, running_mean, running_var,
                              eps=1e-5, stride=(1, 1), padding=(1, 1), dilation=(1, 1),
                              x_scale=None, x_zp=None,
                              out_dtype=jnp.float32, out_layout="NCHW"):
    """Eval-mode forward of FusedQATConv2dBatchNorm2d.  x: (N, Cin, H, W) NCHW.

    x_scale / x_zp: optional precomputed (EMAInfoObserver) activation scale / zero point;
    when omitted the online path recalibrates from x (per-tensor min/max)."""
    n, cin, _, _ = x.shape
    cout, _, kh, kw = conv_w.shape

    # --- BN fusion into conv weight / bias (glue) ---
    inv_std = gamma / jnp.sqrt(running_var + eps)
    w_fused = conv_w * inv_std[:, None, None, None]
    b_fused = beta + (conv_b - running_mean) * inv_std

    # --- per-tensor calibration (global reductions; glue) ---
    if x_scale is None or x_zp is None:
        x_scale, x_zp = calibrate_affine_u8(x)     # online=True path
    w_scale = calibrate_symmetric_s8(w_fused)

    # --- quantize to centred integers, stored as bf16 (exactly representable, |v| <= 255) ---
    # fake_quantize(x) == (q - zp) * s; the (q - zp) factor goes through the MXU and the
    # scalar s_x*s_w is applied to the f32 accumulator inside the kernel.
    xq = (jnp.clip(jnp.round(x / x_scale) + x_zp, 0.0, 255.0) - x_zp).astype(jnp.bfloat16)
    wq = jnp.clip(jnp.round(w_fused / w_scale), -128.0, 127.0).astype(jnp.bfloat16)

    # --- im2col of the quantized activations (zero pad == quantized zero, exact) ---
    # TODO(synk): move im2col into the kernel (pl.ANY + manual strided DMA) to avoid the
    #             kh*kw HBM amplification of the patch matrix.
    patches, oh, ow = _im2col(xq, kh, kw, stride, padding, dilation)       # (M, K) bf16
    m, k = patches.shape
    w_mat = wq.reshape(cout, k).T                                          # (K, Cout) bf16

    # --- tiling: pad K / Cout to 128 lanes, choose (tm, tn) against the VMEM budget ---
    out_bytes = jnp.dtype(out_dtype).itemsize
    vmem_budget, vmem_limit = _tpu_vmem_config()
    k_pad = _round_up(k, 128)
    cout_pad = _round_up(cout, 128)
    tm, tn, w_bufs = _choose_tiles(m, k_pad, cout_pad, vmem_budget, out_bytes)
    cout_pad = _round_up(cout_pad, tn)
    m_pad = _round_up(m, tm)
    n_m, n_n = m_pad // tm, cout_pad // tn

    # TODO(synk): fold these pads into the im2col construction to save a glue-side copy
    #             when XLA fails to fuse them.
    patches = jnp.pad(patches, ((0, m_pad - m), (0, k_pad - k)))
    w_mat = jnp.pad(w_mat, ((0, k_pad - k), (0, cout_pad - cout)))
    bias2d = jnp.pad(b_fused.astype(jnp.float32).reshape(1, cout),
                     ((0, 0), (0, cout_pad - cout)))
    dq_scale = (x_scale * w_scale).reshape(1).astype(jnp.float32)

    single = (w_bufs == 1)  # weight/bias index maps grid-invariant -> single VMEM buffer
    out_mat = pl.pallas_call(
        _qmatmul_dequant_bias_kernel,
        out_shape=jax.ShapeDtypeStruct((m_pad, cout_pad), out_dtype),
        grid=(n_m, n_n),
        in_specs=[
            pl.BlockSpec(memory_space=pltpu.MemorySpace.SMEM),           # dequant scale (1,)
            pl.BlockSpec((tm, k_pad), lambda i, j: (i, 0)),              # quantized patch tile
            _spec((k_pad, tn), lambda i, j: (0, j), single_buffer=single),  # quantized weight
            _spec((1, tn), lambda i, j: (0, j), single_buffer=single),      # fused bias
        ],
        out_specs=pl.BlockSpec((tm, tn), lambda i, j: (i, j)),
        compiler_params=pltpu.CompilerParams(
            dimension_semantics=("parallel", "parallel"),
            vmem_limit_bytes=vmem_limit),
    )(dq_scale, patches, w_mat, bias2d)

    # drop padding, reshape; skip the NCHW transpose when the consumer accepts NHWC
    out_nhwc = out_mat[:m, :cout].reshape(n, oh, ow, cout)
    if out_layout == "NHWC":
        return out_nhwc
    return out_nhwc.transpose(0, 3, 1, 2)


# ----------------------------- demo / test -----------------------------

if __name__ == "__main__":
    key = jax.random.PRNGKey(0)
    k_x, k_w, k_b, k_g, k_be, k_rm, k_rv = jax.random.split(key, 7)

    # Conv2d(in=4, out=8, kernel=3, stride=1, padding=1) + BatchNorm2d(8)
    N, Cin, H, W = 2, 4, 16, 16
    Cout, KH, KW = 8, 3, 3
    eps = 1e-5
    stride, padding, dilation = (1, 1), (1, 1), (1, 1)

    x = jax.random.normal(k_x, (N, Cin, H, W), jnp.float32)
    fan_in = Cin * KH * KW
    lim = 1.0 / np.sqrt(fan_in)
    conv_w = jax.random.uniform(k_w, (Cout, Cin, KH, KW), jnp.float32, -lim, lim)
    conv_b = jax.random.uniform(k_b, (Cout,), jnp.float32, -lim, lim)
    gamma = 1.0 + 0.1 * jax.random.normal(k_g, (Cout,), jnp.float32)
    beta = 0.1 * jax.random.normal(k_be, (Cout,), jnp.float32)
    running_mean = 0.1 * jax.random.normal(k_rm, (Cout,), jnp.float32)
    running_var = jnp.abs(1.0 + 0.1 * jax.random.normal(k_rv, (Cout,), jnp.float32))

    # online path (recalibrates from x)
    out = fused_qat_conv_bn_forward(x, conv_w, conv_b, gamma, beta, running_mean,
                                    running_var, eps=eps, stride=stride,
                                    padding=padding, dilation=dilation)
    out = jax.block_until_ready(out)
    assert out.shape == (N, Cout, H, W), out.shape

    # --- reference: fake-quant + conv-as-im2col + fused bias (matmul in float64 on host) ---
    inv_std = gamma / jnp.sqrt(running_var + eps)
    w_fused = conv_w * inv_std[:, None, None, None]
    b_fused = beta + (conv_b - running_mean) * inv_std

    xs, xzp = calibrate_affine_u8(x)
    ws = calibrate_symmetric_s8(w_fused)

    patches_f32, oh, ow = _im2col(x, KH, KW, stride, padding, dilation)
    x_fq = np.asarray(_fake_quant_affine(patches_f32, xs, xzp, 0.0, 255.0), dtype=np.float64)
    w_fq = np.asarray(_fake_quant_affine(w_fused.reshape(Cout, -1).T, ws, 0.0, -128.0, 127.0),
                      dtype=np.float64)
    ref = x_fq @ w_fq + np.asarray(b_fused, dtype=np.float64)[None, :]
    ref = ref.reshape(N, oh, ow, Cout).transpose(0, 3, 1, 2)

    np.testing.assert_allclose(np.asarray(out), ref, rtol=1e-3, atol=1e-3)

    # offline (EMAInfoObserver eval) path: precomputed activation scale / zero point
    out_offline = fused_qat_conv_bn_forward(x, conv_w, conv_b, gamma, beta, running_mean,
                                            running_var, eps=eps, stride=stride,
                                            padding=padding, dilation=dilation,
                                            x_scale=xs, x_zp=xzp)
    out_offline = jax.block_until_ready(out_offline)
    np.testing.assert_allclose(np.asarray(out_offline), np.asarray(out),
                               rtol=1e-5, atol=1e-5)

    print("KERNEL_OK")
</pallas_src>

<mosaic_0001>
module attributes {stable_mosaic.version = 11 : i64} {
  func.func @_qmatmul_dequant_bias_kernel(%arg0: i32, %arg1: i32, %arg2: memref<1xf32, #tpu.memory_space<smem>>, %arg3: memref<128x128xbf16, #tpu.memory_space<vmem>>, %arg4: memref<128x128xbf16, #tpu.memory_space<vmem>>, %arg5: memref<1x128xf32, #tpu.memory_space<vmem>>, %arg6: memref<128x128xf32, #tpu.memory_space<vmem>>) attributes {dimension_semantics = [#tpu.dimension_semantics<parallel>, #tpu.dimension_semantics<parallel>], iteration_bounds = array<i64: 4, 1>, scalar_prefetch = 0 : i64, scratch_operands = 0 : i64, tpu.core_type = #tpu.core_type<tc>, window_params = [{transform_indices = @transform_0, window_bounds = array<i64: 1>}, {transform_indices = @transform_1, window_bounds = array<i64: 128, 128>}, {pipeline_mode = #tpu.pipeline_mode<synchronous>, transform_indices = @transform_2, window_bounds = array<i64: 128, 128>}, {pipeline_mode = #tpu.pipeline_mode<synchronous>, transform_indices = @transform_3, window_bounds = array<i64: 1, 128>}, {transform_indices = @transform_4, window_bounds = array<i64: 128, 128>}]} {
    %c0 = arith.constant 0 : index
    %c0_0 = arith.constant 0 : index
    %0 = vector.load %arg3[%c0, %c0_0] : memref<128x128xbf16, #tpu.memory_space<vmem>>, vector<128x128xbf16>
    %c0_1 = arith.constant 0 : index
    %c0_2 = arith.constant 0 : index
    %1 = vector.load %arg4[%c0_1, %c0_2] : memref<128x128xbf16, #tpu.memory_space<vmem>>, vector<128x128xbf16>
    %cst = arith.constant dense<0.000000e+00> : vector<128x128xf32>
    %2 = tpu.matmul %0, %1, %cst {dimension_numbers = #tpu.dot_dimension_numbers<[1], [0], [0], [1], [0, 0, 1, 1], [], []>} : vector<128x128xbf16>, vector<128x128xbf16>, vector<128x128xf32> -> vector<128x128xf32>
    %c0_3 = arith.constant 0 : index
    %3 = memref.load %arg2[%c0_3] : memref<1xf32, #tpu.memory_space<smem>>
    %4 = vector.broadcast %3 : f32 to vector<128x128xf32>
    %5 = arith.mulf %2, %4 : vector<128x128xf32>
    %c0_4 = arith.constant 0 : index
    %c0_5 = arith.constant 0 : index
    %6 = vector.load %arg5[%c0_4, %c0_5] : memref<1x128xf32, #tpu.memory_space<vmem>>, vector<1x128xf32>
    %7 = vector.broadcast %6 : vector<1x128xf32> to vector<128x128xf32>
    %8 = arith.addf %5, %7 : vector<128x128xf32>
    %c0_6 = arith.constant 0 : index
    %c0_7 = arith.constant 0 : index
    %9 = vector.load %arg6[%c0_6, %c0_7] : memref<128x128xf32, #tpu.memory_space<vmem>>, vector<128x128xf32>
    tpu.vector_store %arg6[%c0_6, %c0_7], %8 {strides = array<i32>} : memref<128x128xf32, #tpu.memory_space<vmem>>, vector<128x128xf32>,
    return
  }
  func.func @transform_0(%arg0: i32, %arg1: i32) -> i32 {
    %c0_i32 = arith.constant 0 : i32
    %c0_i32_0 = arith.constant 0 : i32
    return %c0_i32 : i32
  }
  func.func @transform_1(%arg0: i32, %arg1: i32) -> (i32, i32) {
    %c0_i32 = arith.constant 0 : i32
    %c0_i32_0 = arith.constant 0 : i32
    return %arg0, %c0_i32 : i32, i32
  }
  func.func @transform_2(%arg0: i32, %arg1: i32) -> (i32, i32) {
    %c0_i32 = arith.constant 0 : i32
    %c0_i32_0 = arith.constant 0 : i32
    return %c0_i32, %arg1 : i32, i32
  }
  func.func @transform_3(%arg0: i32, %arg1: i32) -> (i32, i32) {
    %c0_i32 = arith.constant 0 : i32
    %c0_i32_0 = arith.constant 0 : i32
    return %c0_i32, %arg1 : i32, i32
  }
  func.func @transform_4(%arg0: i32, %arg1: i32) -> (i32, i32) {
    %c0_i32 = arith.constant 0 : i32
    return %arg0, %arg1 : i32, i32
  }
}

</mosaic_0001>

<bundles_post_ra>
// kernel: fused_qat_conv_bn_forward.1
= control target key start
LH: loop header
LB: loop body
LE: loop exit
PB: predicated region body
PF: predicated region fallthrough
CT: control target
= control target key end

     0   :  { %s780_s17 = smov 0   ;;  %s782_s18 = smov 0   ;;  %s901_s0 = inlined_call_operand.<no memory space> [shape: f32[1], index: 0, kind: input, shape index: {}]   ;;  %s902_s1 = inlined_call_operand.vmem [shape: bf16[512,128], index: 1, kind: input, shape index: {}]   ;;  %s903_s2 = inlined_call_operand.vmem [shape: bf16[128,128], index: 2, kind: input, shape index: {}]   ;;  %s904_s3 = inlined_call_operand.vmem [shape: f32[1,128], index: 3, kind: input, shape index: {}]   ;;  %s905_s4 = inlined_call_operand.vmem [shape: f32[512,128], index: 4, kind: output, shape index: {}]  }
   0x1   :  { %9 = sst [smem:[#allocation2]] %s901_s0  ;;  %s784_s19 = smov 0  }
   0x2 LB: > { %s27_s0 = sadd.s32 1, %s746_s18  ;;  %p592_p0 = scmp.ge.s32.totalorder %s750_s19, 1  ;;  %s750_s19 = sphi %s784_s19, %s15_s19   ;;  %s746_s18 = sphi %s782_s18, %s907_s18   ;;  %s742_s17 = sphi %s780_s17, %s906_s17  }
   0x3   : > { %p29_p1 = scmp.ge.s32.totalorder %s27_s0, 4  ;;  %p195_p2 = scmp.lt.s32.totalorder %s750_s19, 5 }
   0x5   : > { %s909_s0 = smov (%p29_p1, %s27_s0), 0  ;;  %p196_p3 = pnand %p592_p0, %p195_p2 }
   0x6   : > { %s593_s28 = sshll.u32 (!%p196_p3), %s742_s17, 4  ;;  %s430_s15 = sld [smem:[#allocation2]] (!%p196_p3) }
   0x7   : > { %199 = sbr.rel (%p196_p3) target bundleno = 207 (0xcf), region = 36  ;;  %p232_p4 = scmp.lt.s32.totalorder (!%p196_p3), %s593_s28, 63 }
   0xc   : > { %v678_v0 = vld [vmem:[%s903_s2 + $0x38] sm:$0xff]  ;;  %v677_v1 = vld [vmem:[%s903_s2 + $0x30] sm:$0xff]  ;;  %v676_v2 = vld [vmem:[%s903_s2 + $0x28] sm:$0xff]  ;;  %s911_s28 = smov (!%p232_p4, %s593_s28), 63  ;;  %v831_v16 = vstv %s430_s15 }
   0xd   : > { %381 = vmatpush.bf16.msra.mxu0 %v678_v0  ;;  %679 = vmatpush.bf16.msra.mxu1 %v678_v0  ;;  %v675_v3 = vld [vmem:[%s903_s2 + $0x20] sm:$0xff]  ;;  %v674_v4 = vld [vmem:[%s903_s2 + $0x18] sm:$0xff]  ;;  %v673_v5 = vld [vmem:[%s903_s2 + $0x10] sm:$0xff]  ;;  %s594_s9 = sshll.u32 %s911_s28, 2  ;;  %s596_s16 = sshll.u32 %s911_s28, 3 }
   0xe   : > { %680 = vmatpush.bf16.msra.mxu2 %v678_v0  ;;  %681 = vmatpush.bf16.msra.mxu3 %v678_v0  ;;  %v672_v6 = vld [vmem:[%s903_s2 + $0x8] sm:$0xff]  ;;  %v671_v7 = vld [vmem:[%s903_s2] sm:$0xff]  ;;  %s235_s14 = scalar_lea.vmem %s902_s1, %s594_s9  ;;  %s844_s23 = scalar_lea.vmem %s905_s4, %s596_s16 }
   0xf   : > { %v663_v8 = vld [vmem:[%s235_s14] sm:$0xff]  ;;  %v665_v9 = vld [vmem:[%s235_s14 + $0x10] sm:$0xff]  ;;  %v664_v12 = vld [vmem:[%s235_s14 + $0x8] sm:$0xff] }
  0x10   : > { %v667_v10 = vld [vmem:[%s235_s14 + $0x20] sm:$0xff]  ;;  %v669_v11 = vld [vmem:[%s235_s14 + $0x30] sm:$0xff]  ;;  %v666_v13 = vld [vmem:[%s235_s14 + $0x18] sm:$0xff] }
  0x11   : > { %382 = vmatpush.bf16.msra.mxu0 %v677_v1  ;;  %682 = vmatpush.bf16.msra.mxu1 %v677_v1  ;;  %v668_v14 = vld [vmem:[%s235_s14 + $0x28] sm:$0xff]  ;;  %v670_v15 = vld [vmem:[%s235_s14 + $0x38] sm:$0xff]  ;;  %v837_v17 = vld [vmem:[%s904_s3] ss:$0 sm:$0xff] }
  0x12   : > { %683 = vmatpush.bf16.msra.mxu2 %v677_v1  ;;  %684 = vmatpush.bf16.msra.mxu3 %v677_v1 }
  0x15   : > { %383 = vmatpush.bf16.msra.mxu0 %v676_v2  ;;  %685 = vmatpush.bf16.msra.mxu1 %v676_v2 }
  0x16   : > { %686 = vmatpush.bf16.msra.mxu2 %v676_v2  ;;  %687 = vmatpush.bf16.msra.mxu3 %v676_v2 }
  0x19   : > { %384 = vmatpush.bf16.msra.mxu0 %v675_v3  ;;  %688 = vmatpush.bf16.msra.mxu1 %v675_v3 }
  0x1a   : > { %689 = vmatpush.bf16.msra.mxu2 %v675_v3  ;;  %690 = vmatpush.bf16.msra.mxu3 %v675_v3 }
  0x1d   : > { %385 = vmatpush.bf16.msra.mxu0 %v674_v4  ;;  %691 = vmatpush.bf16.msra.mxu1 %v674_v4 }
  0x1e   : > { %692 = vmatpush.bf16.msra.mxu2 %v674_v4  ;;  %693 = vmatpush.bf16.msra.mxu3 %v674_v4 }
  0x21   : > { %386 = vmatpush.bf16.msra.mxu0 %v673_v5  ;;  %694 = vmatpush.bf16.msra.mxu1 %v673_v5 }
  0x22   : > { %695 = vmatpush.bf16.msra.mxu2 %v673_v5  ;;  %696 = vmatpush.bf16.msra.mxu3 %v673_v5 }
  0x25   : > { %387 = vmatpush.bf16.msra.mxu0 %v672_v6  ;;  %697 = vmatpush.bf16.msra.mxu1 %v672_v6 }
  0x26   : > { %698 = vmatpush.bf16.msra.mxu2 %v672_v6  ;;  %699 = vmatpush.bf16.msra.mxu3 %v672_v6 }
  0x29   : > { %388 = vmatpush.bf16.msra.mxu0 %v671_v7  ;;  %700 = vmatpush.bf16.msra.mxu1 %v671_v7 }
  0x2a   : > { %701 = vmatpush.bf16.msra.mxu2 %v671_v7  ;;  %702 = vmatpush.bf16.msra.mxu3 %v671_v7 }
  0x2c   : > { %389 = vmatmul.bf16.vlgmr.msra.gmra.mxu0 %v663_v8  ;;  %399 = vmatmul.bf16.vlgmr.msra.gmra.mxu1 %v665_v9 }
  0x2d   : > { %409 = vmatmul.bf16.vlgmr.msra.gmra.mxu2 %v667_v10  ;;  %419 = vmatmul.bf16.vlgmr.msra.gmra.mxu3 %v669_v11 }
  0x3c   : > { %394 = vmatmul.bf16.gmra.mxu0 %v664_v12  ;;  %404 = vmatmul.bf16.gmra.mxu1 %v666_v13 }
  0x3d   : > { %414 = vmatmul.bf16.gmra.mxu2 %v668_v14  ;;  %424 = vmatmul.bf16.gmra.mxu3 %v670_v15 }
  0xa9   : > { %v390_v18 = vpop.f32.mrf.mxu0  ;;  %v400_v19 = vpop.f32.mrf.mxu1 }
  0xaa   : > { %v432_v20 = vmul.f32 %v831_v16, %v390_v18  ;;  %v436_v21 = vmul.f32 %v831_v16, %v400_v19 }
  0xac   : > { %v452_v22 = vadd.f32 %v837_v17, %v432_v20  ;;  %v456_v23 = vadd.f32 %v837_v17, %v436_v21 }
  0xae   : > { %468 = vst [vmem:[%s844_s23] sm:$0xff] %v452_v22 }
  0xaf   : > { %472 = vst [vmem:[%s844_s23 + $0x20] sm:$0xff] %v456_v23 }
  0xb0   : > { %v410_v24 = vpop.f32.mrf.mxu2  ;;  %v420_v25 = vpop.f32.mrf.mxu3 }
  0xb1   : > { %v440_v26 = vmul.f32 %v831_v16, %v410_v24  ;;  %v444_v27 = vmul.f32 %v831_v16, %v420_v25  ;;  %v392_v28 = vpop.f32.mrf.mxu0  ;;  %v402_v29 = vpop.f32.mrf.mxu1 }
  0xb2   : > { %v433_v30 = vmul.f32 %v831_v16, %v392_v28  ;;  %v437_v31 = vmul.f32 %v831_v16, %v402_v29 }
  0xb3   : > { %v460_v32 = vadd.f32 %v837_v17, %v440_v26  ;;  %v464_v33 = vadd.f32 %v837_v17, %v444_v27 }
  0xb4   : > { %v453_v34 = vadd.f32 %v837_v17, %v433_v30  ;;  %v457_v35 = vadd.f32 %v837_v17, %v437_v31 }
  0xb5   : > { %476 = vst [vmem:[%s844_s23 + $0x40] sm:$0xff] %v460_v32 }
  0xb6   : > { %480 = vst [vmem:[%s844_s23 + $0x60] sm:$0xff] %v464_v33 }
  0xb7   : > { %469 = vst [vmem:[%s844_s23 + $0x8] sm:$0xff] %v453_v34 }
  0xb8   : > { %473 = vst [vmem:[%s844_s23 + $0x28] sm:$0xff] %v457_v35  ;;  %v412_v36 = vpop.f32.mrf.mxu2  ;;  %v422_v37 = vpop.f32.mrf.mxu3 }
  0xb9   : > { %v441_v38 = vmul.f32 %v831_v16, %v412_v36  ;;  %v445_v39 = vmul.f32 %v831_v16, %v422_v37  ;;  %v395_v40 = vpop.f32.mrf.mxu0  ;;  %v405_v41 = vpop.f32.mrf.mxu1 }
  0xba   : > { %v434_v42 = vmul.f32 %v831_v16, %v395_v40  ;;  %v438_v43 = vmul.f32 %v831_v16, %v405_v41 }
  0xbb   : > { %v461_v44 = vadd.f32 %v837_v17, %v441_v38  ;;  %v465_v45 = vadd.f32 %v837_v17, %v445_v39 }
  0xbc   : > { %v454_v46 = vadd.f32 %v837_v17, %v434_v42  ;;  %v458_v47 = vadd.f32 %v837_v17, %v438_v43 }
  0xbd   : > { %477 = vst [vmem:[%s844_s23 + $0x48] sm:$0xff] %v461_v44 }
  0xbe   : > { %481 = vst [vmem:[%s844_s23 + $0x68] sm:$0xff] %v465_v45 }
  0xbf   : > { %470 = vst [vmem:[%s844_s23 + $0x10] sm:$0xff] %v454_v46 }
  0xc0   : > { %474 = vst [vmem:[%s844_s23 + $0x30] sm:$0xff] %v458_v47  ;;  %v415_v48 = vpop.f32.mrf.mxu2  ;;  %v425_v49 = vpop.f32.mrf.mxu3 }
  0xc1   : > { %v442_v50 = vmul.f32 %v831_v16, %v415_v48  ;;  %v446_v51 = vmul.f32 %v831_v16, %v425_v49  ;;  %v397_v52 = vpop.f32.mrf.mxu0  ;;  %v407_v53 = vpop.f32.mrf.mxu1 }
  0xc2   : > { %v435_v54 = vmul.f32 %v831_v16, %v397_v52  ;;  %v439_v55 = vmul.f32 %v831_v16, %v407_v53 }
  0xc3   : > { %v462_v56 = vadd.f32 %v837_v17, %v442_v50  ;;  %v466_v57 = vadd.f32 %v837_v17, %v446_v51 }
  0xc4   : > { %v455_v58 = vadd.f32 %v837_v17, %v435_v54  ;;  %v459_v59 = vadd.f32 %v837_v17, %v439_v55 }
  0xc5   : > { %478 = vst [vmem:[%s844_s23 + $0x50] sm:$0xff] %v462_v56 }
  0xc6   : > { %482 = vst [vmem:[%s844_s23 + $0x70] sm:$0xff] %v466_v57 }
  0xc7   : > { %471 = vst [vmem:[%s844_s23 + $0x18] sm:$0xff] %v455_v58 }
  0xc8   : > { %475 = vst [vmem:[%s844_s23 + $0x38] sm:$0xff] %v459_v59  ;;  %v417_v60 = vpop.f32.mrf.mxu2  ;;  %v427_v61 = vpop.f32.mrf.mxu3 }
  0xc9   : > { %v443_v62 = vmul.f32 %v831_v16, %v417_v60  ;;  %v447_v63 = vmul.f32 %v831_v16, %v427_v61 }
  0xcb   : > { %v463_v0 = vadd.f32 %v837_v17, %v443_v62  ;;  %v467_v1 = vadd.f32 %v837_v17, %v447_v63 }
  0xcd   : > { %479 = vst [vmem:[%s844_s23 + $0x58] sm:$0xff] %v463_v0 }
  0xce   : > { %483 = vst [vmem:[%s844_s23 + $0x78] sm:$0xff] %v467_v1 }
  0xcf PF: > { %s15_s19 = sadd.s32 1, %s750_s19   ;;  %s906_s17 = smov %s746_s18 }
  0xd0   : > { %p12_p5 = scmp.ge.s32.totalorder %s15_s19, 6   ;;  %s907_s18 = smov %s909_s0 }
  0xd2   :  { %14 = sbr.rel (!%p12_p5) target bundleno = 2 (0x2), region = 72 }

</bundles_post_ra>
